<compile_context>
chip_gen: v6e
topology: v6e:2x2x1
jax: 0.10.0
libtpu: 0.0.40
codegen_flags: <defaults>
</compile_context>

<pallas_src>
import functools

import jax
import jax.numpy as jnp
from jax.experimental import pallas as pl
from jax.experimental.pallas import tpu as pltpu


def _round_up(x, m):
    return ((x + m - 1) // m) * m


def _pick_block_rows(na8, ncp):
    """Row-block size: multiple of 8, <=512, ~5 (rows, ncp) f32 temps <=20MiB."""
    cap = max(8, (20 * 1024 * 1024) // (5 * 4 * ncp))
    t = min(512, na8, cap)
    return max(8, (t // 8) * 8)


def _supcon_core(logits, pos_f, lmask_f, col_valid, row_valid, out_ref):
    """Shared masked log-softmax + positive-mean + per-block partial sum."""
    # Numerical-stability shift (cancels exactly below); padded columns excluded.
    logits_max = jnp.max(jnp.where(col_valid, logits, -jnp.inf),
                         axis=1, keepdims=True)
    shifted = logits - logits_max
    denom = jnp.sum(jnp.exp(shifted) * lmask_f, axis=1, keepdims=True)   # (t, 1)
    log_denom = jnp.log(denom)
    pos_cnt = jnp.sum(pos_f, axis=1, keepdims=True)                      # (t, 1)
    pos_dot = jnp.sum(pos_f * shifted, axis=1, keepdims=True)            # (t, 1)
    # sum(m * (shifted - log_denom)) == pos_dot - pos_cnt * log_denom.
    # NOTE: anchors with zero positives contribute 0 here (the PyTorch
    # reference would produce NaN); only reachable with degenerate label sets.
    mean_log_prob_pos = (pos_dot - pos_cnt * log_denom) / jnp.maximum(pos_cnt, 1.0)
    per_row = jnp.where(row_valid, -mean_log_prob_pos, 0.0)              # (t, 1)
    partial = jnp.sum(per_row, axis=0, keepdims=True)                    # (1, 1)
    out_ref[...] = jnp.broadcast_to(partial.reshape(1, 1, 1), out_ref.shape)


def _supcon_label_kernel(anchor_ref, contrast_ref, alab_ref, clab_ref, out_ref,
                         *, inv_temperature, num_anchors, num_contrast):
    i = pl.program_id(0)
    a = anchor_ref[...]                       # (t, Dp)   matmul dtype
    c = contrast_ref[...]                     # (Ncp, Dp) matmul dtype
    t, ncp = a.shape[0], c.shape[0]
    logits = jax.lax.dot_general(
        a, c, dimension_numbers=(((1,), (1,)), ((), ())),
        preferred_element_type=jnp.float32) * inv_temperature            # (t, Ncp)
    row = jax.lax.broadcasted_iota(jnp.int32, (t, ncp), 0) + i * t
    col = jax.lax.broadcasted_iota(jnp.int32, (t, ncp), 1)
    col_valid = col < num_contrast
    lmask = jnp.logical_and(col_valid, row != col)      # drop pads + self-contrast
    pos = jnp.logical_and(alab_ref[...] == clab_ref[...], lmask)
    row_valid = (jax.lax.broadcasted_iota(jnp.int32, (t, 1), 0) + i * t) < num_anchors
    _supcon_core(logits, pos.astype(jnp.float32), lmask.astype(jnp.float32),
                 col_valid, row_valid, out_ref)


def _supcon_mask_kernel(anchor_ref, contrast_ref, mask_ref, out_ref,
                        *, inv_temperature, num_anchors, num_contrast):
    i = pl.program_id(0)
    a = anchor_ref[...]
    c = contrast_ref[...]
    t, ncp = a.shape[0], c.shape[0]
    logits = jax.lax.dot_general(
        a, c, dimension_numbers=(((1,), (1,)), ((), ())),
        preferred_element_type=jnp.float32) * inv_temperature
    row = jax.lax.broadcasted_iota(jnp.int32, (t, ncp), 0) + i * t
    col = jax.lax.broadcasted_iota(jnp.int32, (t, ncp), 1)
    col_valid = col < num_contrast
    lmask_f = jnp.logical_and(col_valid, row != col).astype(jnp.float32)
    pos_f = mask_ref[...] * lmask_f
    row_valid = (jax.lax.broadcasted_iota(jnp.int32, (t, 1), 0) + i * t) < num_anchors
    _supcon_core(logits, pos_f, lmask_f, col_valid, row_valid, out_ref)


def supcon_loss(features, labels=None, mask=None, *, temperature=0.07,
                contrast_mode='all', base_temperature=0.07,
                matmul_dtype=jnp.bfloat16):
    """JAX/Pallas port of SupConLoss.forward (forward semantics only).

    Notes:
      * this reference forward never uses `base_temperature` (no T/base_T
        scaling appears in its final loss); we reproduce that exactly.
      * matmul operands run in `matmul_dtype` (bf16 by default, MXU-native)
        with float32 accumulation; pass jnp.float32 for bit-closer numerics.
    """
    del base_temperature  # unused by this reference forward
    features = jnp.asarray(features, jnp.float32)
    if features.ndim < 3:
        raise ValueError('`features` needs to be [bsz, n_views, ...]')
    if features.ndim > 3:
        features = features.reshape(features.shape[0], features.shape[1], -1)
    bsz, n_views, dim = features.shape

    if labels is not None and mask is not None:
        raise ValueError('Cannot define both `labels` and `mask`')

    contrast_count = n_views
    # torch.cat(torch.unbind(features, dim=1), dim=0): view-major stacking.
    contrast_feature = jnp.concatenate(
        [features[:, v] for v in range(n_views)], axis=0)                 # (Nc, D)
    if contrast_mode == 'one':
        anchor_feature = features[:, 0]
        anchor_count = 1
    elif contrast_mode == 'all':
        anchor_feature = contrast_feature
        anchor_count = contrast_count
    else:
        raise ValueError('Unknown mode: {}'.format(contrast_mode))

    na = bsz * anchor_count
    nc = bsz * contrast_count

    dp = _round_up(dim, 128)
    ncp = _round_up(nc, 128)
    tna = _pick_block_rows(_round_up(na, 8), ncp)
    nap = _round_up(na, tna)
    grid = nap // tna

    a = jnp.pad(anchor_feature.astype(matmul_dtype),
                ((0, nap - na), (0, dp - dim)))
    c = jnp.pad(contrast_feature.astype(matmul_dtype),
                ((0, ncp - nc), (0, dp - dim)))

    common = dict(
        out_shape=jax.ShapeDtypeStruct((grid, 8, 128), jnp.float32),
        grid=(grid,),
        out_specs=pl.BlockSpec((1, 8, 128), lambda i: (i, 0, 0)),
        compiler_params=pltpu.CompilerParams(
            dimension_semantics=("parallel",),
            vmem_limit_bytes=48 * 1024 * 1024),
    )
    base_bytes = int(a.size * a.dtype.itemsize + c.size * c.dtype.itemsize
                     + grid * 8 * 128 * 4)
    inv_t = 1.0 / float(temperature)

    if mask is None:
        if labels is None:
            base_labels = jnp.arange(bsz, dtype=jnp.float32)   # SimCLR: eye mask
        else:
            labels = jnp.asarray(labels).reshape(-1)
            if labels.shape[0] != bsz:
                raise ValueError('Num of labels does not match num of features')
            base_labels = labels.astype(jnp.float32)
        alab = jnp.pad(jnp.tile(base_labels, anchor_count),
                       (0, nap - na)).reshape(nap, 1)
        clab = jnp.pad(jnp.tile(base_labels, contrast_count),
                       (0, ncp - nc)).reshape(1, ncp)
        kernel = functools.partial(_supcon_label_kernel, inv_temperature=inv_t,
                                   num_anchors=na, num_contrast=nc)
        out = pl.pallas_call(
            kernel,
            in_specs=[
                pl.BlockSpec((tna, dp), lambda i: (i, 0)),     # anchor rows (pipelined)
                pl.BlockSpec((ncp, dp), lambda i: (0, 0)),     # contrast (VMEM-resident)
                pl.BlockSpec((tna, 1), lambda i: (i, 0)),      # anchor labels
                pl.BlockSpec((1, ncp), lambda i: (0, 0)),      # contrast labels
            ],
            cost_estimate=pl.CostEstimate(
                flops=2 * nap * ncp * dp,
                transcendentals=nap * ncp + nap,
                bytes_accessed=base_bytes + (nap + ncp) * 4),
            **common,
        )(a, c, alab, clab)
    else:
        # Explicit (possibly asymmetric) bsz x bsz mask: a dense tiled mask is
        # intrinsic here, so it is shipped blocked alongside the anchor rows.
        base_mask = jnp.asarray(mask, jnp.float32)
        full_mask = jnp.pad(jnp.tile(base_mask, (anchor_count, contrast_count)),
                            ((0, nap - na), (0, ncp - nc)))
        kernel = functools.partial(_supcon_mask_kernel, inv_temperature=inv_t,
                                   num_anchors=na, num_contrast=nc)
        out = pl.pallas_call(
            kernel,
            in_specs=[
                pl.BlockSpec((tna, dp), lambda i: (i, 0)),
                pl.BlockSpec((ncp, dp), lambda i: (0, 0)),
                pl.BlockSpec((tna, ncp), lambda i: (i, 0)),
            ],
            cost_estimate=pl.CostEstimate(
                flops=2 * nap * ncp * dp,
                transcendentals=nap * ncp + nap,
                bytes_accessed=base_bytes + nap * ncp * 4),
            **common,
        )(a, c, full_mask)

    # loss = (-mean_log_prob_pos).view(anchor_count, bsz).mean()
    return jnp.sum(out[:, 0, 0]) / na


def _supcon_loss_ref(features, labels=None, mask=None, temperature=0.07,
                     contrast_mode='all'):
    """Pure-JAX transliteration of the PyTorch forward (for testing)."""
    features = jnp.asarray(features, jnp.float32)
    bsz, n_views = features.shape[0], features.shape[1]
    features = features.reshape(bsz, n_views, -1)
    if labels is None and mask is None:
        mask = jnp.eye(bsz, dtype=jnp.float32)
    elif labels is not None:
        labels = jnp.asarray(labels).reshape(-1, 1)
        mask = (labels == labels.T).astype(jnp.float32)
    else:
        mask = jnp.asarray(mask, jnp.float32)
    cf = jnp.concatenate([features[:, v] for v in range(n_views)], axis=0)
    if contrast_mode == 'one':
        af, anchor_count = features[:, 0], 1
    else:
        af, anchor_count = cf, n_views
    na, nc = bsz * anchor_count, bsz * n_views
    logits = (af @ cf.T) / temperature
    logits = logits - jnp.max(logits, axis=1, keepdims=True)
    mask = jnp.tile(mask, (anchor_count, n_views))
    logits_mask = 1.0 - jnp.eye(na, nc, dtype=jnp.float32)
    mask = mask * logits_mask
    exp_logits = jnp.exp(logits) * logits_mask
    log_prob = logits - jnp.log(exp_logits.sum(1, keepdims=True))
    mlpp = (mask * log_prob).sum(1) / mask.sum(1)
    return jnp.mean(-mlpp)


if __name__ == "__main__":
    key = jax.random.PRNGKey(0)
    bsz, n_views, dim = 8, 2, 32
    feats = jax.random.normal(key, (bsz, n_views, dim), dtype=jnp.float32)
    feats = feats / jnp.linalg.norm(feats, axis=-1, keepdims=True)
    labels = jnp.array([0, 1, 0, 1, 2, 2, 0, 1], dtype=jnp.int32)
    sym_mask = (labels[:, None] == labels[None, :]).astype(jnp.float32)

    # 1) SimCLR (labels=None), exact-f32 matmul path vs. faithful reference.
    out = jax.block_until_ready(supcon_loss(feats, matmul_dtype=jnp.float32))
    ref = _supcon_loss_ref(feats)
    assert jnp.allclose(out, ref, rtol=1e-4, atol=1e-4), (out, ref)

    # 2) SimCLR, default bf16-MXU path: compare against the reference run on
    #    the same bf16-quantized features (the only intended approximation).
    out_bf = jax.block_until_ready(supcon_loss(feats))
    ref_bf = _supcon_loss_ref(feats.astype(jnp.bfloat16).astype(jnp.float32))
    assert jnp.allclose(out_bf, ref_bf, rtol=5e-4, atol=5e-4), (out_bf, ref_bf)

    # 3) Supervised path (labels), contrast_mode='all'.
    out = jax.block_until_ready(
        supcon_loss(feats, labels=labels, matmul_dtype=jnp.float32))
    ref = _supcon_loss_ref(feats, labels=labels)
    assert jnp.allclose(out, ref, rtol=1e-4, atol=1e-4), (out, ref)

    # 4) Supervised path, contrast_mode='one'.
    out = jax.block_until_ready(
        supcon_loss(feats, labels=labels, contrast_mode='one',
                    matmul_dtype=jnp.float32))
    ref = _supcon_loss_ref(feats, labels=labels, contrast_mode='one')
    assert jnp.allclose(out, ref, rtol=1e-4, atol=1e-4), (out, ref)

    # 5) Explicit mask path (dense-mask kernel variant).
    out = jax.block_until_ready(
        supcon_loss(feats, mask=sym_mask, matmul_dtype=jnp.float32))
    ref = _supcon_loss_ref(feats, mask=sym_mask)
    assert jnp.allclose(out, ref, rtol=1e-4, atol=1e-4), (out, ref)

    print("KERNEL_OK")
</pallas_src>

<mosaic_0001>
module attributes {stable_mosaic.version = 11 : i64} {
  func.func @_supcon_label_kernel(%arg0: i32, %arg1: memref<16x128xf32, #tpu.memory_space<vmem>>, %arg2: memref<128x128xf32, #tpu.memory_space<vmem>>, %arg3: memref<16x1xf32, #tpu.memory_space<vmem>>, %arg4: memref<1x128xf32, #tpu.memory_space<vmem>>, %arg5: memref<1x8x128xf32, #tpu.memory_space<vmem>>) attributes {dimension_semantics = [#tpu.dimension_semantics<parallel>], iteration_bounds = array<i64: 1>, scalar_prefetch = 0 : i64, scratch_operands = 0 : i64, tpu.core_type = #tpu.core_type<tc>, window_params = [{transform_indices = @transform_0, window_bounds = array<i64: 16, 128>}, {pipeline_mode = #tpu.pipeline_mode<synchronous>, transform_indices = @transform_1, window_bounds = array<i64: 128, 128>}, {transform_indices = @transform_2, window_bounds = array<i64: 16, 1>}, {pipeline_mode = #tpu.pipeline_mode<synchronous>, transform_indices = @transform_3, window_bounds = array<i64: 1, 128>}, {transform_indices = @transform_4, window_bounds = array<i64: 1, 8, 128>}]} {
    %c0 = arith.constant 0 : index
    %c0_0 = arith.constant 0 : index
    %0 = vector.load %arg1[%c0, %c0_0] : memref<16x128xf32, #tpu.memory_space<vmem>>, vector<16x128xf32>
    %c0_1 = arith.constant 0 : index
    %c0_2 = arith.constant 0 : index
    %1 = vector.load %arg2[%c0_1, %c0_2] : memref<128x128xf32, #tpu.memory_space<vmem>>, vector<128x128xf32>
    %cst = arith.constant dense<0.000000e+00> : vector<16x128xf32>
    %2 = tpu.matmul %0, %1, %cst {dimension_numbers = #tpu.dot_dimension_numbers<[1], [1], [0], [0], [0, 0, 1, 0], [], []>} : vector<16x128xf32>, vector<128x128xf32>, vector<16x128xf32> -> vector<16x128xf32>
    %cst_3 = arith.constant 14.2857141 : f32
    %3 = vector.broadcast %cst_3 : f32 to vector<16x128xf32>
    %4 = arith.mulf %2, %3 : vector<16x128xf32>
    %5 = tpu.iota {dimensions = array<i32: 0>} : vector<16x128xi32>
    %c16_i32 = arith.constant 16 : i32
    %6 = arith.muli %arg0, %c16_i32 : i32
    %7 = vector.broadcast %6 : i32 to vector<16x128xi32>
    %8 = arith.addi %5, %7 : vector<16x128xi32>
    %9 = tpu.iota {dimensions = array<i32: 1>} : vector<16x128xi32>
    %c16_i32_4 = arith.constant 16 : i32
    %10 = vector.broadcast %c16_i32_4 : i32 to vector<16x128xi32>
    %11 = arith.cmpi slt, %9, %10 : vector<16x128xi32>
    %12 = arith.cmpi ne, %8, %9 : vector<16x128xi32>
    %13 = arith.andi %11, %12 : vector<16x128xi1>
    %c0_5 = arith.constant 0 : index
    %c0_6 = arith.constant 0 : index
    %14 = vector.load %arg3[%c0_5, %c0_6] : memref<16x1xf32, #tpu.memory_space<vmem>>, vector<16x1xf32>
    %c0_7 = arith.constant 0 : index
    %c0_8 = arith.constant 0 : index
    %15 = vector.load %arg4[%c0_7, %c0_8] : memref<1x128xf32, #tpu.memory_space<vmem>>, vector<1x128xf32>
    %16 = vector.broadcast %14 : vector<16x1xf32> to vector<16x128xf32>
    %17 = vector.broadcast %15 : vector<1x128xf32> to vector<16x128xf32>
    %18 = arith.cmpf oeq, %16, %17 : vector<16x128xf32>
    %19 = arith.andi %18, %13 : vector<16x128xi1>
    %20 = tpu.iota {dimensions = array<i32: 0>} : vector<16x1xi32>
    %c16_i32_9 = arith.constant 16 : i32
    %21 = arith.muli %arg0, %c16_i32_9 : i32
    %22 = vector.broadcast %21 : i32 to vector<16x1xi32>
    %23 = arith.addi %20, %22 : vector<16x1xi32>
    %c16_i32_10 = arith.constant 16 : i32
    %24 = vector.broadcast %c16_i32_10 : i32 to vector<16x1xi32>
    %25 = arith.cmpi slt, %23, %24 : vector<16x1xi32>
    %26 = arith.extui %19 : vector<16x128xi1> to vector<16x128xi32>
    %27 = arith.sitofp %26 : vector<16x128xi32> to vector<16x128xf32>
    %28 = arith.extui %13 : vector<16x128xi1> to vector<16x128xi32>
    %29 = arith.sitofp %28 : vector<16x128xi32> to vector<16x128xf32>
    %cst_11 = arith.constant 0xFF800000 : f32
    %30 = vector.broadcast %cst_11 : f32 to vector<16x128xf32>
    %31 = arith.select %11, %4, %30 : vector<16x128xi1>, vector<16x128xf32>
    %cst_12 = arith.constant dense<0xFF800000> : vector<16xf32>
    %32 = vector.multi_reduction <maximumf>, %31, %cst_12 [1] : vector<16x128xf32> to vector<16xf32>
    %33 = vector.shape_cast %32 : vector<16xf32> to vector<16x1xf32>
    %34 = vector.broadcast %33 : vector<16x1xf32> to vector<16x128xf32>
    %35 = arith.subf %4, %34 : vector<16x128xf32>
    %36 = math.exp %35 : vector<16x128xf32>
    %37 = arith.mulf %36, %29 : vector<16x128xf32>
    %cst_13 = arith.constant dense<0.000000e+00> : vector<16xf32>
    %38 = vector.multi_reduction <add>, %37, %cst_13 [1] : vector<16x128xf32> to vector<16xf32>
    %39 = vector.shape_cast %38 : vector<16xf32> to vector<16x1xf32>
    %40 = math.log %39 : vector<16x1xf32>
    %cst_14 = arith.constant dense<0.000000e+00> : vector<16xf32>
    %41 = vector.multi_reduction <add>, %27, %cst_14 [1] : vector<16x128xf32> to vector<16xf32>
    %42 = vector.shape_cast %41 : vector<16xf32> to vector<16x1xf32>
    %43 = arith.mulf %27, %35 : vector<16x128xf32>
    %cst_15 = arith.constant dense<0.000000e+00> : vector<16xf32>
    %44 = vector.multi_reduction <add>, %43, %cst_15 [1] : vector<16x128xf32> to vector<16xf32>
    %45 = vector.shape_cast %44 : vector<16xf32> to vector<16x1xf32>
    %46 = arith.mulf %42, %40 : vector<16x1xf32>
    %47 = arith.subf %45, %46 : vector<16x1xf32>
    %cst_16 = arith.constant 1.000000e+00 : f32
    %48 = vector.broadcast %cst_16 : f32 to vector<16x1xf32>
    %49 = arith.maximumf %42, %48 : vector<16x1xf32>
    %50 = arith.divf %47, %49 : vector<16x1xf32>
    %cst_17 = arith.constant 0.000000e+00 : f32
    %51 = vector.broadcast %cst_17 : f32 to vector<16x1xf32>
    %52 = arith.subf %51, %50 : vector<16x1xf32>
    %cst_18 = arith.constant 0.000000e+00 : f32
    %53 = vector.broadcast %cst_18 : f32 to vector<16x1xf32>
    %54 = arith.select %25, %52, %53 : vector<16x1xi1>, vector<16x1xf32>
    %cst_19 = arith.constant dense<0.000000e+00> : vector<1xf32>
    %55 = vector.multi_reduction <add>, %54, %cst_19 [0] : vector<16x1xf32> to vector<1xf32>
    %56 = vector.shape_cast %55 : vector<1xf32> to vector<1x1xf32>
    %57 = vector.shape_cast %56 : vector<1x1xf32> to vector<1x1x1xf32>
    %58 = vector.shape_cast %57 : vector<1x1x1xf32> to vector<1x1x1xf32>
    %59 = vector.broadcast %58 : vector<1x1x1xf32> to vector<1x8x128xf32>
    %c0_20 = arith.constant 0 : index
    %c0_21 = arith.constant 0 : index
    %c0_22 = arith.constant 0 : index
    %60 = vector.load %arg5[%c0_20, %c0_21, %c0_22] : memref<1x8x128xf32, #tpu.memory_space<vmem>>, vector<1x8x128xf32>
    tpu.vector_store %arg5[%c0_20, %c0_21, %c0_22], %59 {strides = array<i32>} : memref<1x8x128xf32, #tpu.memory_space<vmem>>, vector<1x8x128xf32>,
    return
  }
  func.func @transform_0(%arg0: i32) -> (i32, i32) {
    %c0_i32 = arith.constant 0 : i32
    %c0_i32_0 = arith.constant 0 : i32
    return %arg0, %c0_i32 : i32, i32
  }
  func.func @transform_1(%arg0: i32) -> (i32, i32) {
    %c0_i32 = arith.constant 0 : i32
    %c0_i32_0 = arith.constant 0 : i32
    %c0_i32_1 = arith.constant 0 : i32
    return %c0_i32, %c0_i32_0 : i32, i32
  }
  func.func @transform_2(%arg0: i32) -> (i32, i32) {
    %c0_i32 = arith.constant 0 : i32
    %c0_i32_0 = arith.constant 0 : i32
    return %arg0, %c0_i32 : i32, i32
  }
  func.func @transform_3(%arg0: i32) -> (i32, i32) {
    %c0_i32 = arith.constant 0 : i32
    %c0_i32_0 = arith.constant 0 : i32
    %c0_i32_1 = arith.constant 0 : i32
    return %c0_i32, %c0_i32_0 : i32, i32
  }
  func.func @transform_4(%arg0: i32) -> (i32, i32, i32) {
    %c0_i32 = arith.constant 0 : i32
    %c0_i32_0 = arith.constant 0 : i32
    %c0_i32_1 = arith.constant 0 : i32
    return %arg0, %c0_i32, %c0_i32_0 : i32, i32, i32
  }
}

</mosaic_0001>

<bundles_post_ra>
// kernel: tpu_custom_call.1
= control target key start
LH: loop header
LB: loop body
LE: loop exit
PB: predicated region body
PF: predicated region fallthrough
CT: control target
= control target key end

     0   :  { %9 = vsyncpa [#allocation3], 0  ;;  %s421_s0 = inlined_call_operand.vmem [shape: f32[16,128], index: 0, kind: input, shape index: {}]   ;;  %s422_s1 = inlined_call_operand.hbm [shape: f32[128,128], index: 1, kind: input, shape index: {}]   ;;  %s423_s2 = inlined_call_operand.vmem [shape: f32[16,1], index: 2, kind: input, shape index: {}]   ;;  %s424_s3 = inlined_call_operand.vmem [shape: f32[1,128], index: 3, kind: input, shape index: {}]   ;;  %s425_s4 = inlined_call_operand.hbm [shape: f32[1,8,128], index: 4, kind: output, shape index: {}]  }
   0x1   :  { %10 = vsyncpa [#allocation4], 0  ;;  %s365_s15 = smov [#allocation2]  }
   0x2   :  { %s18_s16 = sshll.u32 %s365_s15, 4  ;;  %s19_s16 = int_to_ptr.vmem [resolvable:$true] %s18_s16 }
   0x3   :  { %s329_s17 = scalar_lea.vmem %s19_s16, 2048  ;;  %p334_p1 = scmp.lt.s32.totalorder %s19_s16, %s19_s16 }
   0x4   :  { %p330_p0 = scmp.ne.s32.totalorder %s19_s16, %s329_s17  ;;  %p335_p2 = scmp.lt.s32.totalorder %s329_s17, %s329_s17 }
   0x6   :  { %p336_p3 = por %p335_p2, %p334_p1 }
   0x8   :  { %p337_p4 = pnand %p336_p3, %p330_p0 }
   0xa   :  { %340 = shalt.err (!%p337_p4)
}
   0xb   :  { %s366_s18 = smov 128   ;;  %s367_s19 = smov 8  }
   0xc   :  { %24 = dma.hbm_to_vmem [thread:$0]  %s422_s1, 2048, %s19_s16, [#allocation3], %s366_s18, %s366_s18, %s367_s19  }
   0xd   :  { %361 = dma.done.wait [#allocation3], 2048  }
   0xe   :  { %362 = vsyncadd [#allocation3], 4294965248  ;;  %v49_v0 = vld [vmem:[#allocation2 + $0x78] sm:$0xff]  ;;  %v48_v1 = vld [vmem:[#allocation2 + $0x70] sm:$0xff]  ;;  %v368_v19 = vmov 0   ;;  %v127_v21 = vlaneseq  ;;  %v369_v33 = vmov 0.0  }
   0xf   :  { %266 = vmatprep.subr.mxu0 %v49_v0  ;;  %v47_v2 = vld [vmem:[#allocation2 + $0x68] sm:$0xff]  ;;  %v32_v3 = vld [vmem:[%s421_s0] sm:$0xff]  ;;  %v45_v5 = vld [vmem:[#allocation2 + $0x58] sm:$0xff]  ;;  %307 = vset.pattern.permute.xlu1 %v368_v19 }
  0x10   :  { %267 = vmatpush3.xpose.msra.mxu0 %v49_v0  ;;  %298 = vmatprep.mubr.f32.mxu0 %v32_v3  ;;  %v46_v4 = vld [vmem:[#allocation2 + $0x60] sm:$0xff]  ;;  %v44_v6 = vld [vmem:[#allocation2 + $0x50] sm:$0xff]  ;;  %v43_v7 = vld [vmem:[#allocation2 + $0x48] sm:$0xff]  ;;  %v135_v23 = vand.u32 127, %v127_v21  ;;  %v128_v31 = vshrl.u32 %v127_v21, 7 }
  0x11   :  { %268 = vmatprep.subr.mxu0 %v48_v1  ;;  %v42_v8 = vld [vmem:[#allocation2 + $0x40] sm:$0xff]  ;;  %v41_v9 = vld [vmem:[#allocation2 + $0x38] sm:$0xff]  ;;  %v40_v10 = vld [vmem:[#allocation2 + $0x30] sm:$0xff]  ;;  %308 = vset.pattern.permute.xlu0 %v368_v19 }
  0x12   :  { %v39_v11 = vld [vmem:[#allocation2 + $0x28] sm:$0xff]  ;;  %v38_v12 = vld [vmem:[#allocation2 + $0x20] sm:$0xff]  ;;  %v37_v13 = vld [vmem:[#allocation2 + $0x18] sm:$0xff]  ;;  %vm136_vm0 = vcmp.lt.s32.totalorder %v135_v23, 16  ;;  %vm137_vm2 = vcmp.ne.s32.totalorder %v128_v31, %v135_v23  ;;  %v129_v32 = vadd.s32 8, %v128_v31 }
  0x13   :  { %v36_v14 = vld [vmem:[#allocation2 + $0x10] sm:$0xff]  ;;  %v35_v15 = vld [vmem:[#allocation2 + $0x8] sm:$0xff]  ;;  %v34_v16 = vld [vmem:[#allocation2] sm:$0xff] }
  0x14   :  { %269 = vmatpush3.xpose.msra.mxu0 %v48_v1  ;;  %v33_v17 = vld [vmem:[%s421_s0 + $0x8] sm:$0xff]  ;;  %v141_v18 = vld [vmem:[%s423_s2] sm:$0xff]  ;;  %vm139_vm3 = vmand %vm136_vm0, %vm137_vm2  ;;  %vm138_vm5 = vcmp.ne.s32.totalorder %v129_v32, %v135_v23 }
  0x15   :  { %270 = vmatprep.subr.mxu0 %v47_v2  ;;  %146 = vperm.xlu1 %307, %v141_v18   ;;  %v142_v20 = vld [vmem:[%s423_s2 + $0x8] sm:$0xff]  ;;  %v243_v29 = vld [vmem:[%s424_s3] ss:$0 sm:$0xff]  ;;  %vm140_vm7 = vmand %vm136_vm0, %vm138_vm5  ;;  %v246_v37 = vsel %vm139_vm3, 1.0, %v369_v33  ;;  %s370_s2 = smov [#allocation5]  }
  0x16   :  { %v247_v38 = vsel %vm140_vm7, 1.0, %v369_v33  ;;  %s234_s3 = sshll.u32 %s370_s2, 4  ;;  %s235_s3 = int_to_ptr.vmem [resolvable:$true] %s234_s3 }
  0x17   :  { %s341_s30 = scalar_lea.vmem %s235_s3, 128  ;;  %p346_p6 = scmp.lt.s32.totalorder %s235_s3, %s235_s3 }
  0x18   :  { %271 = vmatpush3.xpose.msra.mxu0 %v47_v2  ;;  %p342_p5 = scmp.ne.s32.totalorder %s235_s3, %s341_s30  ;;  %p347_p7 = scmp.lt.s32.totalorder %s341_s30, %s341_s30 }
  0x19   :  { %272 = vmatprep.subr.mxu0 %v46_v4  ;;  %151 = vperm.xlu1 %307, %v142_v20  }
  0x1a   :  { %p348_p8 = por %p347_p7, %p346_p6 }
  0x1c   :  { %273 = vmatpush3.xpose.msra.mxu0 %v46_v4  ;;  %p349_p9 = pnand %p348_p8, %p342_p5 }
  0x1d   :  { %274 = vmatprep.subr.mxu0 %v45_v5 }
  0x20   :  { %275 = vmatpush3.xpose.msra.mxu0 %v45_v5 }
  0x21   :  { %276 = vmatprep.subr.mxu0 %v44_v6 }
  0x24   :  { %277 = vmatpush3.xpose.msra.mxu0 %v44_v6 }
  0x25   :  { %278 = vmatprep.subr.mxu0 %v43_v7 }
  0x28   :  { %279 = vmatpush3.xpose.msra.mxu0 %v43_v7 }
  0x29   :  { %280 = vmatprep.subr.mxu0 %v42_v8 }
  0x2c   :  { %281 = vmatpush3.xpose.msra.mxu0 %v42_v8 }
  0x2d   :  { %282 = vmatprep.subr.mxu0 %v41_v9 }
  0x30   :  { %283 = vmatpush3.xpose.msra.mxu0 %v41_v9 }
  0x31   :  { %284 = vmatprep.subr.mxu0 %v40_v10 }
  0x34   :  { %285 = vmatpush3.xpose.msra.mxu0 %v40_v10 }
  0x35   :  { %286 = vmatprep.subr.mxu0 %v39_v11 }
  0x38   :  { %287 = vmatpush3.xpose.msra.mxu0 %v39_v11 }
  0x39   :  { %288 = vmatprep.subr.mxu0 %v38_v12 }
  0x3c   :  { %289 = vmatpush3.xpose.msra.mxu0 %v38_v12 }
  0x3d   :  { %290 = vmatprep.subr.mxu0 %v37_v13 }
  0x40   :  { %291 = vmatpush3.xpose.msra.mxu0 %v37_v13 }
  0x41   :  { %292 = vmatprep.subr.mxu0 %v36_v14 }
  0x44   :  { %293 = vmatpush3.xpose.msra.mxu0 %v36_v14 }
  0x45   :  { %294 = vmatprep.subr.mxu0 %v35_v15 }
  0x48   :  { %295 = vmatpush3.xpose.msra.mxu0 %v35_v15 }
  0x49   :  { %296 = vmatprep.subr.mxu0 %v34_v16 }
  0x4c   :  { %297 = vmatpush3.xpose.msra.mxu0 %v34_v16 }
  0x4f   :  { %299 = vmatmul.mubr.f32.vlgmr.msra.gmra.mxu0 %v33_v17 }
  0x90   :  { %v147_v30 = vpop.permute.xlu1 %146 }
  0x91   :  { %vm160_vm1 = vcmp.eq.f32.partialorder %v147_v30, %v243_v29 }
  0x92   :  { %vm162_vm4 = vmand %vm160_vm1, %vm139_vm3 }
  0x93   :  { %v244_v34 = vsel %vm162_vm4, 1.0, %v369_v33 }
  0x94   :  { %v152_v35 = vpop.permute.xlu1 %151 }
  0x95   :  { %vm161_vm6 = vcmp.eq.f32.partialorder %v152_v35, %v243_v29 }
  0x96   :  { %vm163_vm8 = vmand %vm161_vm6, %vm140_vm7 }
  0x97   :  { %v245_v36 = vsel %vm163_vm8, 1.0, %v369_v33 }
 0x10f   :  { %v300_v22 = vpop.f32.mrf.mxu0 }
 0x110   :  { %v126_v26 = vmul.f32 14.285714, %v300_v22 }
 0x111   :  { %v116_v24 = vpop.f32.mrf.mxu0 }
 0x112   :  { %v125_v25 = vmul.f32 14.285714, %v116_v24  ;;  %v175_v28 = vsel %vm136_vm0, %v126_v26, -inf }
 0x114   :  { %v174_v27 = vsel %vm136_vm0, %v125_v25, -inf }
 0x115   :  { %176 = vmax.xlane.f32.xlu0 %v174_v27 }
 0x119   :  { %178 = vmax.xlane.f32.xlu0 %v175_v28 }
 0x11d   :  { %196 = vadd.xlane.f32.xlu0 %v244_v34 }
 0x19e   :  { %v177_v39 = vpop.xlane.xlu0 %176 }
 0x19f   :  { %v180_v40 = vsub.f32 %v125_v25, %v177_v39 }
 0x1a1   :  { %v182_v41 = vmul.f32 1.442695, %v180_v40  ;;  %v200_v49 = vmul.f32 %v244_v34, %v180_v40 }
 0x1a2   :  { %v179_v42 = vpop.xlane.xlu0 %178 }
 0x1a3   :  { %309 = vpow2.f32 %v182_v41  ;;  %v181_v43 = vsub.f32 %v126_v26, %v179_v42 }
 0x1a5   :  { %v184_v44 = vmul.f32 1.442695, %v181_v43  ;;  %v201_v50 = vmul.f32 %v245_v36, %v181_v43 }
 0x1a6   :  { %v197_v51 = vpop.xlane.xlu0 %196 }
 0x1a7   :  { %311 = vpow2.f32 %v184_v44  ;;  %v210_v55 = vmax.f32 %v197_v51, 1.0 }
 0x1b0   :  { %v310_v45 = vpop.eup %309 }
 0x1b1   :  { %v186_v46 = vmul.f32 %v310_v45, %v246_v37 }
 0x1b3   :  { %188 = vadd.xlane.f32.xlu0 %v186_v46 }
 0x1b4   :  { %v312_v47 = vpop.eup %311 }
 0x1b5   :  { %v187_v48 = vmul.f32 %v312_v47, %v247_v38 }
 0x1b7   :  { %198 = vadd.xlane.f32.xlu0 %v245_v36  ;;  %190 = vadd.xlane.f32.xlu1 %v187_v48 }
 0x1bb   :  { %202 = vadd.xlane.f32.xlu0 %v200_v49 }
 0x1bf   :  { %204 = vadd.xlane.f32.xlu0 %v201_v50 }
 0x23c   :  { %v189_v52 = vpop.xlane.xlu0 %188 }
 0x23d   :  { %313 = vlog2.f32 %v189_v52 }
 0x240   :  { %v191_v53 = vpop.xlane.xlu1 %190  ;;  %v199_v54 = vpop.xlane.xlu0 %198 }
 0x241   :  { %315 = vlog2.f32 %v191_v53  ;;  %v211_v56 = vmax.f32 %v199_v54, 1.0 }
 0x242   :  { %317 = vrcp.f32 %v210_v55 }
 0x243   :  { %319 = vrcp.f32 %v211_v56 }
 0x244   :  { %v203_v59 = vpop.xlane.xlu0 %202 }
 0x248   :  { %v205_v2 = vpop.xlane.xlu0 %204 }
 0x24a   :  { %v314_v57 = vpop.eup %313 }
 0x24b   :  { %v193_v58 = vmul.f32 0.6931472, %v314_v57 }
 0x24d   :  { %v206_v60 = vmul.f32 %v197_v51, %v193_v58 }
 0x24e   :  { %v316_v61 = vpop.eup %315 }
 0x24f   :  { %v195_v62 = vmul.f32 0.6931472, %v316_v61  ;;  %v208_v63 = vsub.f32 %v203_v59, %v206_v60  ;;  %v318_v1 = vpop.eup %317 }
 0x250   :  { %v320_v5 = vpop.eup %319 }
 0x251   :  { %v207_v0 = vmul.f32 %v199_v54, %v195_v62  ;;  %v213_v3 = vmul.f32 %v318_v1, %v208_v63 }
 0x253   :  { %v209_v4 = vsub.f32 %v205_v2, %v207_v0  ;;  %v216_v7 = vsub.f32 0.0, %v213_v3 }
 0x255   :  { %v215_v6 = vmul.f32 %v320_v5, %v209_v4 }
 0x257   :  { %v217_v8 = vsub.f32 0.0, %v215_v6 }
 0x259   :  { %v220_v9 = vadd.f32 %v217_v8, %v216_v7 }
 0x25b   :  { %v221_v10 = vrot.slane %v220_v9, 4 }
 0x25d   :  { %v222_v11 = vadd.f32 %v221_v10, %v220_v9 }
 0x25f   :  { %v223_v12 = vrot.slane %v222_v11, 2 }
 0x261   :  { %v224_v13 = vadd.f32 %v223_v12, %v222_v11 }
 0x263   :  { %v225_v14 = vrot.slane %v224_v13, 1 }
 0x265   :  { %v226_v15 = vadd.f32 %v225_v14, %v224_v13 }
 0x267   :  { %227 = vst [vmem:[#allocation5] sm:$0xff] %v226_v15 }
 0x268   :  { %352 = shalt.err (!%p349_p9)
}
 0x269   :  { %237 = dma.vmem_to_hbm [thread:$0]  %s235_s3, 128, %s425_s4, [#allocation4]  }
 0x26a   :  { %363 = dma.done.wait [#allocation4], 128  }
 0x26b   :  { %364 = vsyncadd [#allocation4], 4294967168 }
 0x26c   :  { %241 = vsyncpa [#allocation3], 1 }
 0x26d   :  { %242 = vsyncpa [#allocation4], 1 }

</bundles_post_ra>
